<compile_context>
chip_gen: v6e
topology: v6e:2x2x1
jax: 0.10.0
libtpu: 0.0.40
codegen_flags: <defaults>
</compile_context>

<pallas_src>
import jax
import jax.numpy as jnp
from jax import lax
from jax.experimental import pallas as pl
from jax.experimental.pallas import tpu as pltpu


# -----------------------------------------------------------------------------
# Adaptive average pool as matmuls (exact PyTorch AdaptiveAvgPool2d semantics)
# -----------------------------------------------------------------------------
def _pool_matrix(in_size, out_size):
    """(out_size, in_size) matrix whose row o averages the PyTorch adaptive
    pool window [floor(o*in/out), ceil((o+1)*in/out))."""
    o = jnp.arange(out_size)
    start = (o * in_size) // out_size
    end = ((o + 1) * in_size + out_size - 1) // out_size        # ceil
    pos = jnp.arange(in_size)
    mask = (pos[None, :] >= start[:, None]) & (pos[None, :] < end[:, None])
    return mask.astype(jnp.float32) / (end - start).astype(jnp.float32)[:, None]


def adaptive_avg_pool2d_matmul(x, out_h, out_w):
    """x: (B, C, H, W) f32 -> (B, C, out_h, out_w) via Prow @ x @ Pcol^T."""
    B, C, H, W = x.shape
    prow = _pool_matrix(H, out_h)                                # (out_h, H)
    pcol = _pool_matrix(W, out_w)                                # (out_w, W)
    # width pool: one big (B*C*H, W) @ (W, out_w) matmul
    t = (x.reshape(B * C * H, W) @ pcol.T).reshape(B, C, H, out_w)
    # height pool: contract H
    return jnp.einsum("oh,bchp->bcop", prow, t)                  # (B,C,out_h,out_w)


# -----------------------------------------------------------------------------
# Pallas kernel (per batch element, transposed orientation):
#   H = relu(W1(76,76) @ P(76,400) + b1)   ;   O = relu(W2(50,76) @ H + b2)
# -----------------------------------------------------------------------------
def _branch_kernel(p_ref, w1_ref, b1_ref, w2_ref, b2_ref, out_ref):
    p = p_ref[0]                                                  # (76, 400)
    h = jnp.dot(w1_ref[...], p, preferred_element_type=jnp.float32) + b1_ref[...]
    h = jnp.maximum(h, 0.0)                                       # ReLU after conv_1
    o = jnp.dot(w2_ref[...], h, preferred_element_type=jnp.float32) + b2_ref[...]
    out_ref[0] = jnp.maximum(o, 0.0)                              # ReLU after conv_2


def _run_branch_kernel(patches, w1, b1, w2, b2):
    """patches: (B, 76, 400); w1: (76,76); b1: (76,1); w2: (50,76); b2: (50,1)."""
    B, R, M = patches.shape
    C2 = w2.shape[0]
    return pl.pallas_call(
        _branch_kernel,
        out_shape=jax.ShapeDtypeStruct((B, C2, M), jnp.float32),
        grid_spec=pltpu.PrefetchScalarGridSpec(
            num_scalar_prefetch=0,
            grid=(B,),
            in_specs=[
                pl.BlockSpec((1, R, M), lambda b: (b, 0, 0)),        # patches[b]
                pl.BlockSpec((w1.shape[0], w1.shape[1]), lambda b: (0, 0)),  # resident
                pl.BlockSpec((b1.shape[0], 1), lambda b: (0, 0)),
                pl.BlockSpec((C2, w2.shape[1]), lambda b: (0, 0)),
                pl.BlockSpec((C2, 1), lambda b: (0, 0)),
            ],
            out_specs=pl.BlockSpec((1, C2, M), lambda b: (b, 0, 0)),
        ),
        compiler_params=pltpu.CompilerParams(
            dimension_semantics=("parallel",)),                      # v7x: 2 TCs
    )(patches, w1, b1, w2, b2)


# -----------------------------------------------------------------------------
# Full forward: pool(40,40) -> conv_1(k2,s2)+ReLU -> conv_2(k1,s1,pad=1)+ReLU
# -----------------------------------------------------------------------------
def patch_branch_forward(x, params):
    w1, b1, w2, b2 = params["w1"], params["b1"], params["w2"], params["b2"]
    B, Cin = x.shape[0], w1.shape[1]          # Cin = 19
    C1 = w1.shape[0]                          # 76
    C2 = w2.shape[0]                          # 50

    # 1) adaptive avg pool to (40, 40) via matmuls
    pooled = adaptive_avg_pool2d_matmul(x.astype(jnp.float32), 40, 40)  # (B,19,40,40)

    # 2) im2col for the 2x2 stride-2 conv, transposed orientation: (B, 76, 400)
    #    rows = (c, kh, kw) flattened (PyTorch weight order), cols = (i, j) row-major
    p6 = pooled.reshape(B, Cin, 20, 2, 20, 2)                    # (b,c,i,kh,j,kw)
    patches = jnp.transpose(p6, (0, 1, 3, 5, 2, 4)).reshape(B, Cin * 4, 400)

    w1_mat = w1.reshape(C1, Cin * 4)          # (76, 76)  cols = (c,kh,kw)
    w2_mat = w2.reshape(C2, C1)               # (50, 76)
    b1_col = b1.reshape(C1, 1)
    b2_col = b2.reshape(C2, 1)

    # 3) Pallas hot path: matmul+bias+relu twice, lane-dense (.., 400) output
    inner = _run_branch_kernel(patches, w1_mat, b1_col, w2_mat, b2_col)  # (B,50,400)
    inner_nchw = inner.reshape(B, C2, 20, 20)                    # layout-free reshape

    # 4) padding=1 of the 1x1 conv: border pixels see zero input -> relu(bias2)
    # TODO(synk): the border fill + interior update stays as one small XLA
    # dynamic-update-slice instead of being written from inside the kernel.
    border_val = jnp.maximum(b2, 0.0)                            # (50,)
    out = jnp.broadcast_to(border_val[None, :, None, None], (B, C2, 22, 22))
    out = out.at[:, :, 1:21, 1:21].set(inner_nchw)
    return out


# -----------------------------------------------------------------------------
# Pure-JAX reference (independent path: integral-image pool + lax.conv)
# -----------------------------------------------------------------------------
def _adaptive_avg_pool2d_integral(x, out_h, out_w):
    B, C, H, W = x.shape
    cs = jnp.cumsum(jnp.cumsum(x, axis=2), axis=3)
    S = jnp.pad(cs, ((0, 0), (0, 0), (1, 0), (1, 0)))
    hs = (jnp.arange(out_h) * H) // out_h
    he = ((jnp.arange(out_h) + 1) * H + out_h - 1) // out_h
    ws = (jnp.arange(out_w) * W) // out_w
    we = ((jnp.arange(out_w) + 1) * W + out_w - 1) // out_w
    S_he = S[:, :, he, :]
    S_hs = S[:, :, hs, :]
    reg = (S_he[:, :, :, we] - S_he[:, :, :, ws]
           - S_hs[:, :, :, we] + S_hs[:, :, :, ws])
    area = ((he - hs)[:, None] * (we - ws)[None, :]).astype(x.dtype)
    return reg / area


def patch_branch_reference(x, params):
    w1, b1, w2, b2 = params["w1"], params["b1"], params["w2"], params["b2"]
    pooled = _adaptive_avg_pool2d_integral(x.astype(jnp.float32), 40, 40)
    dn = ("NCHW", "OIHW", "NCHW")
    y = lax.conv_general_dilated(pooled, w1, (2, 2), "VALID", dimension_numbers=dn)
    y = jnp.maximum(y + b1[None, :, None, None], 0.0)
    z = lax.conv_general_dilated(y, w2, (1, 1), [(1, 1), (1, 1)], dimension_numbers=dn)
    z = jnp.maximum(z + b2[None, :, None, None], 0.0)
    return z


# -----------------------------------------------------------------------------
def make_params(key, in_channel=19, out_channel=50):
    k1, k2, k3, k4 = jax.random.split(key, 4)
    w1 = jax.random.normal(k1, (76, in_channel, 2, 2), jnp.float32) * 0.1
    b1 = jax.random.normal(k2, (76,), jnp.float32) * 0.1
    w2 = jax.random.normal(k3, (out_channel, 76, 1, 1), jnp.float32) * 0.1
    b2 = jax.random.normal(k4, (out_channel,), jnp.float32) * 0.1
    return {"w1": w1, "b1": b1, "w2": w2, "b2": b2}


if __name__ == "__main__":
    key = jax.random.PRNGKey(0)
    kx, kp = jax.random.split(key)
    # small input: batch=2, channels=19 (fixed by module), spatial=64x64
    x = jax.random.normal(kx, (2, 19, 64, 64), jnp.float32)
    params = make_params(kp)

    fwd = jax.jit(patch_branch_forward)
    out = jax.block_until_ready(fwd(x, params))
    assert out.shape == (2, 50, 22, 22), out.shape

    ref = jax.block_until_ready(jax.jit(patch_branch_reference)(x, params))
    err = float(jnp.max(jnp.abs(out - ref)))
    assert err < 1e-3, err

    print("KERNEL_OK")
</pallas_src>

<mosaic_0001>
module attributes {stable_mosaic.version = 11 : i64} {
  func.func @_branch_kernel(%arg0: i32, %arg1: memref<1x76x400xf32, #tpu.memory_space<vmem>>, %arg2: memref<76x76xf32, #tpu.memory_space<vmem>>, %arg3: memref<76x1xf32, #tpu.memory_space<vmem>>, %arg4: memref<50x76xf32, #tpu.memory_space<vmem>>, %arg5: memref<50x1xf32, #tpu.memory_space<vmem>>, %arg6: memref<1x50x400xf32, #tpu.memory_space<vmem>>) attributes {dimension_semantics = [#tpu.dimension_semantics<parallel>], iteration_bounds = array<i64: 2>, scalar_prefetch = 0 : i64, scratch_operands = 0 : i64, tpu.core_type = #tpu.core_type<tc>, window_params = [{transform_indices = @transform_0, window_bounds = array<i64: 1, 76, 400>}, {pipeline_mode = #tpu.pipeline_mode<synchronous>, transform_indices = @transform_1, window_bounds = array<i64: 76, 76>}, {pipeline_mode = #tpu.pipeline_mode<synchronous>, transform_indices = @transform_2, window_bounds = array<i64: 76, 1>}, {pipeline_mode = #tpu.pipeline_mode<synchronous>, transform_indices = @transform_3, window_bounds = array<i64: 50, 76>}, {pipeline_mode = #tpu.pipeline_mode<synchronous>, transform_indices = @transform_4, window_bounds = array<i64: 50, 1>}, {transform_indices = @transform_5, window_bounds = array<i64: 1, 50, 400>}]} {
    %c0 = arith.constant 0 : index
    %c0_0 = arith.constant 0 : index
    %c0_1 = arith.constant 0 : index
    %0 = vector.load %arg1[%c0, %c0_0, %c0_1] : memref<1x76x400xf32, #tpu.memory_space<vmem>>, vector<1x76x400xf32>
    %1 = vector.shape_cast %0 : vector<1x76x400xf32> to vector<76x400xf32>
    %c0_2 = arith.constant 0 : index
    %c0_3 = arith.constant 0 : index
    %2 = vector.load %arg2[%c0_2, %c0_3] : memref<76x76xf32, #tpu.memory_space<vmem>>, vector<76x76xf32>
    %cst = arith.constant dense<0.000000e+00> : vector<76x400xf32>
    %3 = tpu.matmul %2, %1, %cst {dimension_numbers = #tpu.dot_dimension_numbers<[1], [0], [0], [1], [0, 0, 1, 1], [], []>} : vector<76x76xf32>, vector<76x400xf32>, vector<76x400xf32> -> vector<76x400xf32>
    %c0_4 = arith.constant 0 : index
    %c0_5 = arith.constant 0 : index
    %4 = vector.load %arg3[%c0_4, %c0_5] : memref<76x1xf32, #tpu.memory_space<vmem>>, vector<76x1xf32>
    %5 = vector.broadcast %4 : vector<76x1xf32> to vector<76x400xf32>
    %6 = arith.addf %3, %5 : vector<76x400xf32>
    %cst_6 = arith.constant 0.000000e+00 : f32
    %7 = vector.broadcast %cst_6 : f32 to vector<76x400xf32>
    %8 = arith.maximumf %6, %7 : vector<76x400xf32>
    %c0_7 = arith.constant 0 : index
    %c0_8 = arith.constant 0 : index
    %9 = vector.load %arg4[%c0_7, %c0_8] : memref<50x76xf32, #tpu.memory_space<vmem>>, vector<50x76xf32>
    %cst_9 = arith.constant dense<0.000000e+00> : vector<50x400xf32>
    %10 = tpu.matmul %9, %8, %cst_9 {dimension_numbers = #tpu.dot_dimension_numbers<[1], [0], [0], [1], [0, 0, 1, 1], [], []>} : vector<50x76xf32>, vector<76x400xf32>, vector<50x400xf32> -> vector<50x400xf32>
    %c0_10 = arith.constant 0 : index
    %c0_11 = arith.constant 0 : index
    %11 = vector.load %arg5[%c0_10, %c0_11] : memref<50x1xf32, #tpu.memory_space<vmem>>, vector<50x1xf32>
    %12 = vector.broadcast %11 : vector<50x1xf32> to vector<50x400xf32>
    %13 = arith.addf %10, %12 : vector<50x400xf32>
    %cst_12 = arith.constant 0.000000e+00 : f32
    %14 = vector.broadcast %cst_12 : f32 to vector<50x400xf32>
    %15 = arith.maximumf %13, %14 : vector<50x400xf32>
    %c0_13 = arith.constant 0 : index
    %c0_14 = arith.constant 0 : index
    %c0_15 = arith.constant 0 : index
    %16 = vector.load %arg6[%c0_13, %c0_14, %c0_15] : memref<1x50x400xf32, #tpu.memory_space<vmem>>, vector<1x50x400xf32>
    %17 = vector.shape_cast %16 : vector<1x50x400xf32> to vector<50x400xf32>
    %18 = vector.shape_cast %15 : vector<50x400xf32> to vector<1x50x400xf32>
    tpu.vector_store %arg6[%c0_13, %c0_14, %c0_15], %18 {strides = array<i32>} : memref<1x50x400xf32, #tpu.memory_space<vmem>>, vector<1x50x400xf32>,
    return
  }
  func.func @transform_0(%arg0: i32) -> (i32, i32, i32) {
    %c0_i32 = arith.constant 0 : i32
    %c0_i32_0 = arith.constant 0 : i32
    %c0_i32_1 = arith.constant 0 : i32
    return %arg0, %c0_i32, %c0_i32_0 : i32, i32, i32
  }
  func.func @transform_1(%arg0: i32) -> (i32, i32) {
    %c0_i32 = arith.constant 0 : i32
    %c0_i32_0 = arith.constant 0 : i32
    %c0_i32_1 = arith.constant 0 : i32
    return %c0_i32, %c0_i32_0 : i32, i32
  }
  func.func @transform_2(%arg0: i32) -> (i32, i32) {
    %c0_i32 = arith.constant 0 : i32
    %c0_i32_0 = arith.constant 0 : i32
    %c0_i32_1 = arith.constant 0 : i32
    return %c0_i32, %c0_i32_0 : i32, i32
  }
  func.func @transform_3(%arg0: i32) -> (i32, i32) {
    %c0_i32 = arith.constant 0 : i32
    %c0_i32_0 = arith.constant 0 : i32
    %c0_i32_1 = arith.constant 0 : i32
    return %c0_i32, %c0_i32_0 : i32, i32
  }
  func.func @transform_4(%arg0: i32) -> (i32, i32) {
    %c0_i32 = arith.constant 0 : i32
    %c0_i32_0 = arith.constant 0 : i32
    %c0_i32_1 = arith.constant 0 : i32
    return %c0_i32, %c0_i32_0 : i32, i32
  }
  func.func @transform_5(%arg0: i32) -> (i32, i32, i32) {
    %c0_i32 = arith.constant 0 : i32
    %c0_i32_0 = arith.constant 0 : i32
    %c0_i32_1 = arith.constant 0 : i32
    return %arg0, %c0_i32, %c0_i32_0 : i32, i32, i32
  }
}

</mosaic_0001>

<bundles_post_ra>
// kernel: patch_branch_forward.1
= control target key start
LH: loop header
LB: loop body
LE: loop exit
PB: predicated region body
PF: predicated region fallthrough
CT: control target
= control target key end

     0   :  { %s1183_s18 = smov 0   ;;  %s1520_s0 = inlined_call_operand.vmem [shape: f32[2,76,400], index: 0, kind: input, shape index: {}]   ;;  %s1521_s1 = inlined_call_operand.vmem [shape: f32[76,76], index: 1, kind: input, shape index: {}]   ;;  %s1522_s2 = inlined_call_operand.vmem [shape: f32[76,1], index: 2, kind: input, shape index: {}]   ;;  %s1523_s3 = inlined_call_operand.vmem [shape: f32[50,76], index: 3, kind: input, shape index: {}]   ;;  %s1524_s4 = inlined_call_operand.vmem [shape: f32[50,1], index: 4, kind: input, shape index: {}]   ;;  %s1525_s5 = inlined_call_operand.vmem [shape: f32[2,50,400], index: 5, kind: output, shape index: {}]  }
   0x1 LB: > { %s1078_s19 = sadd.s32 4294967295, %s1149_s18   ;;  %p1082_p0 = scmp.ge.s32.totalorder %s1149_s18, 1  ;;  %s1149_s18 = sphi %s1183_s18, %s15_s18  }
   0x2   : > { %p187_p1 = scmp.lt.s32.totalorder %s1149_s18, 3 }
   0x4   : > { %p188_p2 = pnand %p1082_p0, %p187_p1 }
   0x5   : > { %p215_p3 = scmp.lt.s32.totalorder (!%p188_p2), %s1078_s19, 1 }
   0x6   : > { %191 = sbr.rel (%p188_p2) target bundleno = 515 (0x203), region = 40 }
   0xb   : > { %v1526_v0 = vmov 0.0   ;;  %s1530_s19 = smov (!%p215_p3, %s1078_s19), 1  ;;  %v1152_v1 = vmov 0   ;;  %v282_v2 = vld [vmem:[%s1522_s2 + $0x38] sm:$0xff]  ;;  %v284_v3 = vld [vmem:[%s1522_s2 + $0x48] sm:$0xf] }
   0xc   : > { %443 = vmatprep.mubr.f32.mxu0 %v1526_v0  ;;  %568 = vmatprep.mubr.f32.mxu1 %v1526_v0  ;;  %s1129_s22 = smul.u32 320, %s1530_s19  ;;  %vm366_vm0 = vcmask 1043456   ;;  %v265_v44 = vld [vmem:[%s1521_s1] sm:$0xff]  ;;  %vm335_vm1 = vcmask 621568   ;;  %v281_v45 = vld [vmem:[%s1522_s2 + $0x30] sm:$0xff]  ;;  %v266_v47 = vld [vmem:[%s1521_s1 + $0x8] sm:$0xff] }
   0xd   : > { %1142 = vset.pattern.permute.xlu1 %v1152_v1  ;;  %1141 = vset.pattern.permute.xlu0 %v1152_v1  ;;  %v283_v46 = vld [vmem:[%s1522_s2 + $0x40] sm:$0xff]  ;;  %v280_v49 = vld [vmem:[%s1522_s2 + $0x28] sm:$0xff]  ;;  %v267_v50 = vld [vmem:[%s1521_s1 + $0x10] sm:$0xff]  ;;  %s1130_s23 = smul.u32 224, %s1530_s19  ;;  %vm996_vm2 = vcmask 130048   ;;  %vm1021_vm3 = vcmask 123904  }
   0xe   : > { %322 = vperm.xlu1 %1142, %v282_v2   ;;  %332 = vperm.xlu0 %1141, %v284_v3   ;;  %s1205_s27 = scalar_lea.vmem %s1520_s0, %s1129_s22  ;;  %v279_v48 = vld [vmem:[%s1522_s2 + $0x20] sm:$0xff]  ;;  %v277_v51 = vld [vmem:[%s1522_s2 + $0x10] sm:$0xff]  ;;  %v278_v52 = vld [vmem:[%s1522_s2 + $0x18] sm:$0xff] }
   0xf   : > { %v262_v4 = vld [vmem:[%s1205_s27 + $0x128] sm:$0xf]  ;;  %v264_v5 = vld [vmem:[%s1205_s27 + $0x138] sm:$0xf]  ;;  %v261_v6 = vld [vmem:[%s1205_s27 + $0x120] sm:$0xf]  ;;  %s1481_s26 = scalar_lea.vmem %s1525_s5, %s1130_s23 }
  0x10   : > { %1085 = vmatprep.subr.msk.mxu0 %vm366_vm0, %v262_v4  ;;  %1097 = vmatprep.subr.msk.mxu1 %vm366_vm0, %v264_v5  ;;  %v263_v7 = vld [vmem:[%s1205_s27 + $0x130] sm:$0xf]  ;;  %v258_v8 = vld [vmem:[%s1205_s27 + $0x108] sm:$0xff]  ;;  %v260_v9 = vld [vmem:[%s1205_s27 + $0x118] sm:$0xff] }
  0x11   : > { %1086 = vmatpush1.msk.msra.mxu0 %vm366_vm0, %v261_v6  ;;  %1098 = vmatpush1.msk.msra.mxu1 %vm366_vm0, %v263_v7  ;;  %v257_v10 = vld [vmem:[%s1205_s27 + $0x100] sm:$0xff]  ;;  %v259_v11 = vld [vmem:[%s1205_s27 + $0x110] sm:$0xff]  ;;  %v254_v12 = vld [vmem:[%s1205_s27 + $0xe8] sm:$0xff] }
  0x12   : > { %393 = vmatprep.subr.mxu0 %v258_v8  ;;  %518 = vmatprep.subr.mxu1 %v260_v9  ;;  %v256_v13 = vld [vmem:[%s1205_s27 + $0xf8] sm:$0xff]  ;;  %v253_v14 = vld [vmem:[%s1205_s27 + $0xe0] sm:$0xff]  ;;  %v255_v15 = vld [vmem:[%s1205_s27 + $0xf0] sm:$0xff] }
  0x13   : > { %394 = vmatpush1.msra.mxu0 %v257_v10  ;;  %519 = vmatpush1.msra.mxu1 %v259_v11  ;;  %v250_v16 = vld [vmem:[%s1205_s27 + $0xc8] sm:$0xff]  ;;  %v252_v17 = vld [vmem:[%s1205_s27 + $0xd8] sm:$0xff]  ;;  %v249_v18 = vld [vmem:[%s1205_s27 + $0xc0] sm:$0xff] }
  0x14   : > { %395 = vmatprep.subr.mxu0 %v254_v12  ;;  %520 = vmatprep.subr.mxu1 %v256_v13  ;;  %v251_v19 = vld [vmem:[%s1205_s27 + $0xd0] sm:$0xff]  ;;  %v246_v20 = vld [vmem:[%s1205_s27 + $0xa8] sm:$0xff]  ;;  %v248_v21 = vld [vmem:[%s1205_s27 + $0xb8] sm:$0xff] }
  0x15   : > { %396 = vmatpush1.msra.mxu0 %v253_v14  ;;  %521 = vmatpush1.msra.mxu1 %v255_v15  ;;  %v245_v22 = vld [vmem:[%s1205_s27 + $0xa0] sm:$0xff]  ;;  %v247_v23 = vld [vmem:[%s1205_s27 + $0xb0] sm:$0xff]  ;;  %v242_v24 = vld [vmem:[%s1205_s27 + $0x88] sm:$0xff] }
  0x16   : > { %397 = vmatprep.subr.mxu0 %v250_v16  ;;  %522 = vmatprep.subr.mxu1 %v252_v17  ;;  %v244_v25 = vld [vmem:[%s1205_s27 + $0x98] sm:$0xff]  ;;  %v241_v26 = vld [vmem:[%s1205_s27 + $0x80] sm:$0xff]  ;;  %v243_v27 = vld [vmem:[%s1205_s27 + $0x90] sm:$0xff] }
  0x17   : > { %398 = vmatpush1.msra.mxu0 %v249_v18  ;;  %523 = vmatpush1.msra.mxu1 %v251_v19  ;;  %v238_v28 = vld [vmem:[%s1205_s27 + $0x68] sm:$0xff]  ;;  %v240_v29 = vld [vmem:[%s1205_s27 + $0x78] sm:$0xff]  ;;  %v237_v30 = vld [vmem:[%s1205_s27 + $0x60] sm:$0xff] }
  0x18   : > { %399 = vmatprep.subr.mxu0 %v246_v20  ;;  %524 = vmatprep.subr.mxu1 %v248_v21  ;;  %v239_v31 = vld [vmem:[%s1205_s27 + $0x70] sm:$0xff]  ;;  %v234_v32 = vld [vmem:[%s1205_s27 + $0x48] sm:$0xff]  ;;  %v236_v33 = vld [vmem:[%s1205_s27 + $0x58] sm:$0xff] }
  0x19   : > { %400 = vmatpush1.msra.mxu0 %v245_v22  ;;  %525 = vmatpush1.msra.mxu1 %v247_v23  ;;  %v233_v34 = vld [vmem:[%s1205_s27 + $0x40] sm:$0xff]  ;;  %v235_v35 = vld [vmem:[%s1205_s27 + $0x50] sm:$0xff]  ;;  %v230_v36 = vld [vmem:[%s1205_s27 + $0x28] sm:$0xff] }
  0x1a   : > { %401 = vmatprep.subr.mxu0 %v242_v24  ;;  %526 = vmatprep.subr.mxu1 %v244_v25  ;;  %v232_v37 = vld [vmem:[%s1205_s27 + $0x38] sm:$0xff]  ;;  %v229_v38 = vld [vmem:[%s1205_s27 + $0x20] sm:$0xff]  ;;  %v231_v39 = vld [vmem:[%s1205_s27 + $0x30] sm:$0xff] }
  0x1b   : > { %402 = vmatpush1.msra.mxu0 %v241_v26  ;;  %527 = vmatpush1.msra.mxu1 %v243_v27  ;;  %v226_v40 = vld [vmem:[%s1205_s27 + $0x8] sm:$0xff]  ;;  %v228_v41 = vld [vmem:[%s1205_s27 + $0x18] sm:$0xff]  ;;  %v225_v42 = vld [vmem:[%s1205_s27] sm:$0xff] }
  0x1c   : > { %403 = vmatprep.subr.mxu0 %v238_v28  ;;  %528 = vmatprep.subr.mxu1 %v240_v29  ;;  %v227_v43 = vld [vmem:[%s1205_s27 + $0x10] sm:$0xff]  ;;  %v268_v53 = vld [vmem:[%s1521_s1 + $0x18] sm:$0xff]  ;;  %v275_v54 = vld [vmem:[%s1522_s2] sm:$0xff] }
  0x1d   : > { %404 = vmatpush1.msra.mxu0 %v237_v30  ;;  %529 = vmatpush1.msra.mxu1 %v239_v31  ;;  %v276_v55 = vld [vmem:[%s1522_s2 + $0x8] sm:$0xff]  ;;  %v269_v56 = vld [vmem:[%s1521_s1 + $0x20] sm:$0xff]  ;;  %v678_v60 = vld [vmem:[%s1524_s4 + $0x10] sm:$0xff] }
  0x1e   : > { %405 = vmatprep.subr.mxu0 %v234_v32  ;;  %530 = vmatprep.subr.mxu1 %v236_v33  ;;  %v676_v57 = vld [vmem:[%s1524_s4] sm:$0xff]  ;;  %v677_v58 = vld [vmem:[%s1524_s4 + $0x8] sm:$0xff]  ;;  %v679_v61 = vld [vmem:[%s1524_s4 + $0x18] sm:$0xff] }
  0x1f   : > { %406 = vmatpush1.msra.mxu0 %v233_v34  ;;  %531 = vmatpush1.msra.mxu1 %v235_v35  ;;  %v270_v59 = vld [vmem:[%s1521_s1 + $0x28] sm:$0xff]  ;;  %v271_v62 = vld [vmem:[%s1521_s1 + $0x30] sm:$0xff]  ;;  %v680_v63 = vld [vmem:[%s1524_s4 + $0x20] sm:$0xff] }
  0x20   : > { %407 = vmatprep.subr.mxu0 %v230_v36  ;;  %532 = vmatprep.subr.mxu1 %v232_v37  ;;  %v681_v1 = vld [vmem:[%s1524_s4 + $0x28] sm:$0xff]  ;;  %v272_v2 = vld [vmem:[%s1521_s1 + $0x38] sm:$0xff]  ;;  %v682_v3 = vld [vmem:[%s1524_s4 + $0x30] sm:$0x3] }
  0x21   : > { %408 = vmatpush1.msra.mxu0 %v229_v38  ;;  %533 = vmatpush1.msra.mxu1 %v231_v39  ;;  %v273_v4 = vld [vmem:[%s1521_s1 + $0x40] sm:$0xff]  ;;  %v274_v5 = vld [vmem:[%s1521_s1 + $0x48] sm:$0xf] }
  0x22   : > { %409 = vmatprep.subr.mxu0 %v226_v40  ;;  %534 = vmatprep.subr.mxu1 %v228_v41 }
  0x23   : > { %410 = vmatpush1.msra.mxu0 %v225_v42  ;;  %535 = vmatpush1.msra.mxu1 %v227_v43 }
  0x24   : > { %1087 = vmatmul.mubr.msk.f32.vlgmr.msra.gmra.mxu0 %vm335_vm1, %v265_v44  ;;  %1099 = vmatmul.mubr.msk.f32.vlgmr.msra.gmra.mxu1 %vm335_vm1, %v265_v44 }
  0x25   : > { %449 = vmatprep.mubr.f32.mxu0 %v1526_v0  ;;  %574 = vmatprep.mubr.f32.mxu1 %v1526_v0 }
  0x26   : > { %317 = vperm.xlu1 %1142, %v281_v45   ;;  %327 = vperm.xlu0 %1141, %v283_v46  }
  0x28   : > { %1088 = vmatmul.mubr.msk.f32.gmra.mxu0 %vm335_vm1, %v266_v47  ;;  %1100 = vmatmul.mubr.msk.f32.gmra.mxu1 %vm335_vm1, %v266_v47 }
  0x29   : > { %455 = vmatprep.mubr.f32.mxu0 %v1526_v0  ;;  %580 = vmatprep.mubr.f32.mxu1 %v1526_v0 }
  0x2a   : > { %307 = vperm.xlu1 %1142, %v279_v48   ;;  %312 = vperm.xlu0 %1141, %v280_v49  }
  0x2c   : > { %1089 = vmatmul.mubr.msk.f32.gmra.mxu0 %vm335_vm1, %v267_v50  ;;  %1101 = vmatmul.mubr.msk.f32.gmra.mxu1 %vm335_vm1, %v267_v50 }
  0x2d   : > { %461 = vmatprep.mubr.f32.mxu0 %v1526_v0  ;;  %586 = vmatprep.mubr.f32.mxu1 %v1526_v0 }
  0x2e   : > { %297 = vperm.xlu1 %1142, %v277_v51   ;;  %302 = vperm.xlu0 %1141, %v278_v52  }
  0x30   : > { %1090 = vmatmul.mubr.msk.f32.gmra.mxu0 %vm335_vm1, %v268_v53  ;;  %1102 = vmatmul.mubr.msk.f32.gmra.mxu1 %vm335_vm1, %v268_v53 }
  0x31   : > { %467 = vmatprep.mubr.f32.mxu0 %v1526_v0  ;;  %592 = vmatprep.mubr.f32.mxu1 %v1526_v0 }
  0x32   : > { %287 = vperm.xlu1 %1142, %v275_v54   ;;  %292 = vperm.xlu0 %1141, %v276_v55  }
  0x34   : > { %1091 = vmatmul.mubr.msk.f32.gmra.mxu0 %vm335_vm1, %v269_v56  ;;  %1103 = vmatmul.mubr.msk.f32.gmra.mxu1 %vm335_vm1, %v269_v56 }
  0x35   : > { %473 = vmatprep.mubr.f32.mxu0 %v1526_v0  ;;  %598 = vmatprep.mubr.f32.mxu1 %v1526_v0 }
  0x36   : > { %685 = vperm.xlu0 %1141, %v676_v57   ;;  %690 = vperm.xlu1 %1142, %v677_v58  }
  0x38   : > { %1092 = vmatmul.mubr.msk.f32.gmra.mxu0 %vm335_vm1, %v270_v59  ;;  %1104 = vmatmul.mubr.msk.f32.gmra.mxu1 %vm335_vm1, %v270_v59 }
  0x39   : > { %479 = vmatprep.mubr.f32.mxu0 %v1526_v0  ;;  %604 = vmatprep.mubr.f32.mxu1 %v1526_v0 }
  0x3a   : > { %695 = vperm.xlu0 %1141, %v678_v60   ;;  %700 = vperm.xlu1 %1142, %v679_v61  }
  0x3c   : > { %1093 = vmatmul.mubr.msk.f32.gmra.mxu0 %vm335_vm1, %v271_v62  ;;  %1105 = vmatmul.mubr.msk.f32.gmra.mxu1 %vm335_vm1, %v271_v62 }
  0x3d   : > { %485 = vmatprep.mubr.f32.mxu0 %v1526_v0  ;;  %610 = vmatprep.mubr.f32.mxu1 %v1526_v0 }
  0x3e   : > { %705 = vperm.xlu0 %1141, %v680_v63   ;;  %710 = vperm.xlu1 %1142, %v681_v1  }
  0x40   : > { %1094 = vmatmul.mubr.msk.f32.gmra.mxu0 %vm335_vm1, %v272_v2  ;;  %1106 = vmatmul.mubr.msk.f32.gmra.mxu1 %vm335_vm1, %v272_v2 }
  0x41   : > { %491 = vmatprep.mubr.f32.mxu0 %v1526_v0  ;;  %616 = vmatprep.mubr.f32.mxu1 %v1526_v0 }
  0x42   : > { %715 = vperm.xlu0 %1141, %v682_v3  }
  0x44   : > { %1095 = vmatmul.mubr.msk.f32.gmra.mxu0 %vm335_vm1, %v273_v4  ;;  %1107 = vmatmul.mubr.msk.f32.gmra.mxu1 %vm335_vm1, %v273_v4 }
  0x45   : > { %497 = vmatprep.mubr.f32.mxu0 %v1526_v0  ;;  %622 = vmatprep.mubr.f32.mxu1 %v1526_v0 }
  0x48   : > { %1096 = vmatmul.mubr.msk.f32.gmra.mxu0 %vm335_vm1, %v274_v5  ;;  %1108 = vmatmul.mubr.msk.f32.gmra.mxu1 %vm335_vm1, %v274_v5 }
  0x49   : > { %815 = vmatprep.mubr.f32.mxu0 %v1526_v0  ;;  %922 = vmatprep.mubr.f32.mxu1 %v1526_v0 }
  0x89   : > { %v333_v34 = vpop.permute.xlu0 %332  ;;  %v323_v37 = vpop.permute.xlu1 %322 }
  0xa1   : > { %v328_v42 = vpop.permute.xlu0 %327  ;;  %v318_v45 = vpop.permute.xlu1 %317 }
  0xa5   : > { %v313_v52 = vpop.permute.xlu0 %312  ;;  %v308_v59 = vpop.permute.xlu1 %307 }
  0xe4   : > { %v1366_v6 = vpop.f32.mrf.mxu0  ;;  %v1368_v7 = vpop.f32.mrf.mxu1 }
  0xe6   : > { %v1370_v8 = vpop.f32.mrf.mxu0  ;;  %v1372_v9 = vpop.f32.mrf.mxu1 }
  0xe8   : > { %v1374_v10 = vpop.f32.mrf.mxu0  ;;  %v1376_v11 = vpop.f32.mrf.mxu1 }
  0xea   : > { %v1378_v12 = vpop.f32.mrf.mxu0  ;;  %v1380_v13 = vpop.f32.mrf.mxu1 }
  0xec   : > { %v1382_v14 = vpop.f32.mrf.mxu0  ;;  %v1384_v15 = vpop.f32.mrf.mxu1 }
  0xee   : > { %v1386_v16 = vpop.f32.mrf.mxu0  ;;  %v1388_v17 = vpop.f32.mrf.mxu1 }
  0xf0   : > { %v1390_v18 = vpop.f32.mrf.mxu0  ;;  %v1392_v19 = vpop.f32.mrf.mxu1 }
  0xf2   : > { %v1394_v20 = vpop.f32.mrf.mxu0  ;;  %v1396_v21 = vpop.f32.mrf.mxu1 }
  0xf4   : > { %v1398_v22 = vpop.f32.mrf.mxu0  ;;  %v1400_v23 = vpop.f32.mrf.mxu1 }
  0xf6   : > { %v1402_v24 = vpop.f32.mrf.mxu0  ;;  %v1404_v25 = vpop.f32.mrf.mxu1 }
  0xf8   : > { %v475_v26 = vpop.f32.mrf.mxu0  ;;  %v600_v27 = vpop.f32.mrf.mxu1 }
  0xfa   : > { %v477_v28 = vpop.f32.mrf.mxu0  ;;  %v602_v29 = vpop.f32.mrf.mxu1 }
  0xfc   : > { %v481_v30 = vpop.f32.mrf.mxu0  ;;  %v606_v31 = vpop.f32.mrf.mxu1 }
  0xfe   : > { %v483_v32 = vpop.f32.mrf.mxu0  ;;  %v608_v33 = vpop.f32.mrf.mxu1 }
  0xff   : > { %v484_v5 = vadd.f32 %v483_v32, %v318_v45 }
 0x100   : > { %v487_v35 = vpop.f32.mrf.mxu0  ;;  %v612_v36 = vpop.f32.mrf.mxu1 }
 0x101   : > { %v488_v1 = vadd.f32 %v487_v35, %v323_v37  ;;  %v613_v2 = vadd.f32 %v612_v36, %v323_v37  ;;  %v303_v35 = vpop.permute.xlu0 %302  ;;  %v478_v36 = vadd.f32 %v477_v28, %v313_v52  ;;  %v470_v28 = vadd.f32 %v1398_v22, %v308_v59 }
 0x102   : > { %v489_v38 = vpop.f32.mrf.mxu0  ;;  %v614_v39 = vpop.f32.mrf.mxu1 }
 0x103   : > { %v490_v60 = vadd.f32 %v489_v38, %v323_v37  ;;  %v615_v61 = vadd.f32 %v614_v39, %v323_v37  ;;  %v603_v37 = vadd.f32 %v602_v29, %v313_v52  ;;  %v601_v39 = vadd.f32 %v600_v27, %v313_v52 }
 0x104   : > { %v493_v40 = vpop.f32.mrf.mxu0  ;;  %v618_v41 = vpop.f32.mrf.mxu1  ;;  %v595_v29 = vadd.f32 %v1400_v23, %v308_v59  ;;  %v466_v27 = vadd.f32 %v1394_v20, %v303_v35 }
 0x105   : > { %v494_v57 = vadd.f32 %v493_v40, %v328_v42  ;;  %v619_v58 = vadd.f32 %v618_v41, %v328_v42  ;;  %v607_v40 = vadd.f32 %v606_v31, %v318_v45  ;;  %v658_v38 = vmax.f32 %v490_v60, 0.0  ;;  %v293_v23 = vpop.permute.xlu0 %292 }
 0x106   : > { %v495_v43 = vpop.f32.mrf.mxu0  ;;  %v620_v44 = vpop.f32.mrf.mxu1  ;;  %v660_v32 = vmax.f32 %v615_v61, 0.0  ;;  %v472_v31 = vadd.f32 %v1402_v24, %v308_v59  ;;  %v652_v24 = vmax.f32 %v603_v37, 0.0  ;;  %v651_v22 = vmax.f32 %v601_v39, 0.0  ;;  %v674_v37 = vld [vmem:[%s1523_s3 + $0x28] sm:$0xff] }
 0x107   : > { %v496_v53 = vadd.f32 %v495_v43, %v328_v42  ;;  %v621_v54 = vadd.f32 %v620_v44, %v328_v42  ;;  %v661_v41 = vmax.f32 %v494_v57, 0.0  ;;  %v663_v42 = vmax.f32 %v619_v58, 0.0 }
 0x108   : > { %v499_v46 = vpop.f32.mrf.mxu0  ;;  %v624_v47 = vpop.f32.mrf.mxu1  ;;  %v657_v43 = vmax.f32 %v488_v1, 0.0  ;;  %v659_v44 = vmax.f32 %v613_v2, 0.0  ;;  %v646_v20 = vmax.f32 %v472_v31, 0.0  ;;  %v647_v58 = vmax.f32 %v595_v29, 0.0 }
 0x109   : > { %v500_v48 = vadd.f32 %v499_v46, %v333_v34  ;;  %v625_v49 = vadd.f32 %v624_v47, %v333_v34  ;;  %v609_v46 = vadd.f32 %v608_v33, %v318_v45  ;;  %v662_v47 = vmax.f32 %v496_v53, 0.0 }
 0x10a   : > { %v501_v50 = vpop.f32.mrf.mxu0  ;;  %v626_v51 = vpop.f32.mrf.mxu1  ;;  %v664_v0 = vmax.f32 %v621_v54, 0.0  ;;  %v476_v33 = vadd.f32 %v475_v26, %v313_v52  ;;  %v655_v26 = vmax.f32 %v607_v40, 0.0  ;;  %v589_v52 = vadd.f32 %v1392_v19, %v303_v35 }
 0x10b   : > { %v502_v55 = vadd.f32 %v501_v50, %v333_v34  ;;  %v627_v56 = vadd.f32 %v626_v51, %v333_v34  ;;  %v665_v3 = vmax.f32 %v500_v48, 0.0  ;;  %v667_v4 = vmax.f32 %v625_v49, 0.0 }
 0x10c   : > { %v482_v34 = vadd.f32 %v481_v30, %v318_v45  ;;  %v298_v30 = vpop.permute.xlu1 %297  ;;  %v597_v45 = vadd.f32 %v1404_v25, %v308_v59  ;;  %v654_v48 = vmax.f32 %v484_v5, 0.0  ;;  %v656_v49 = vmax.f32 %v609_v46, 0.0 }
 0x10d   : > { %v666_v62 = vmax.f32 %v502_v55, 0.0  ;;  %v668_v63 = vmax.f32 %v627_v56, 0.0  ;;  %v591_v50 = vadd.f32 %v1396_v21, %v303_v35  ;;  %v650_v51 = vmax.f32 %v478_v36, 0.0  ;;  %v673_v36 = vld [vmem:[%s1523_s3 + $0x20] sm:$0xff] }
 0x10e   : > { %v464_v25 = vadd.f32 %v1390_v18, %v303_v35  ;;  %v649_v53 = vmax.f32 %v476_v33, 0.0  ;;  %v460_v54 = vadd.f32 %v1386_v16, %v298_v30  ;;  %v585_v55 = vadd.f32 %v1388_v17, %v298_v30  ;;  %v672_v35 = vld [vmem:[%s1523_s3 + $0x18] sm:$0xff] }
 0x10f   : > { %1109 = vmatprep.subr.msk.mxu0 %vm366_vm0, %v666_v62  ;;  %1118 = vmatprep.subr.msk.mxu1 %vm366_vm0, %v668_v63  ;;  %v648_v56 = vmax.f32 %v597_v45, 0.0  ;;  %v458_v21 = vadd.f32 %v1382_v14, %v298_v30  ;;  %v583_v57 = vadd.f32 %v1384_v15, %v298_v30  ;;  %v645_v18 = vmax.f32 %v470_v28, 0.0 }
 0x110   : > { %1110 = vmatpush1.msk.msra.mxu0 %vm366_vm0, %v665_v3  ;;  %1119 = vmatpush1.msk.msra.mxu1 %vm366_vm0, %v667_v4  ;;  %v288_v19 = vpop.permute.xlu1 %287  ;;  %v454_v59 = vadd.f32 %v1378_v12, %v293_v23  ;;  %v579_v60 = vadd.f32 %v1380_v13, %v293_v23  ;;  %v642_v16 = vmax.f32 %v466_v27, 0.0  ;;  %v644_v61 = vmax.f32 %v591_v50, 0.0 }
 0x111   : > { %765 = vmatprep.subr.mxu0 %v662_v47  ;;  %872 = vmatprep.subr.mxu1 %v664_v0  ;;  %v653_v0 = vmax.f32 %v482_v34, 0.0  ;;  %v452_v17 = vadd.f32 %v1374_v10, %v293_v23  ;;  %v577_v62 = vadd.f32 %v1376_v11, %v293_v23  ;;  %v641_v14 = vmax.f32 %v464_v25, 0.0 }
 0x112   : > { %766 = vmatpush1.msra.mxu0 %v661_v41  ;;  %873 = vmatpush1.msra.mxu1 %v663_v42  ;;  %v643_v63 = vmax.f32 %v589_v52, 0.0  ;;  %v448_v15 = vadd.f32 %v1370_v8, %v288_v19  ;;  %v573_v1 = vadd.f32 %v1372_v9, %v288_v19  ;;  %v638_v2 = vmax.f32 %v460_v54, 0.0  ;;  %v670_v41 = vld [vmem:[%s1523_s3 + $0x8] sm:$0xff]  ;;  %v671_v42 = vld [vmem:[%s1523_s3 + $0x10] sm:$0xff] }
 0x113   : > { %767 = vmatprep.subr.mxu0 %v658_v38  ;;  %874 = vmatprep.subr.mxu1 %v660_v32  ;;  %v640_v12 = vmax.f32 %v585_v55, 0.0  ;;  %v446_v13 = vadd.f32 %v1366_v6, %v288_v19  ;;  %v571_v3 = vadd.f32 %v1368_v7, %v288_v19  ;;  %v637_v4 = vmax.f32 %v458_v21, 0.0  ;;  %v669_v7 = vld [vmem:[%s1523_s3] sm:$0xff]  ;;  %v675_v38 = vld [vmem:[%s1523_s3 + $0x30] sm:$0x3]  ;;  %v686_v32 = vpop.permute.xlu0 %685 }
 0x114   : > { %768 = vmatpush1.msra.mxu0 %v657_v43  ;;  %875 = vmatpush1.msra.mxu1 %v659_v44  ;;  %v639_v10 = vmax.f32 %v583_v57, 0.0  ;;  %v634_v11 = vmax.f32 %v454_v59, 0.0  ;;  %v636_v5 = vmax.f32 %v579_v60, 0.0  ;;  %v633_v46 = vmax.f32 %v452_v17, 0.0  ;;  %v691_v45 = vpop.permute.xlu1 %690 }
 0x115   : > { %769 = vmatprep.subr.mxu0 %v654_v48  ;;  %876 = vmatprep.subr.mxu1 %v656_v49  ;;  %v635_v8 = vmax.f32 %v577_v62, 0.0  ;;  %v630_v9 = vmax.f32 %v448_v15, 0.0  ;;  %v632_v47 = vmax.f32 %v573_v1, 0.0  ;;  %v629_v34 = vmax.f32 %v446_v13, 0.0 }
 0x116   : > { %770 = vmatpush1.msra.mxu0 %v653_v0  ;;  %877 = vmatpush1.msra.mxu1 %v655_v26  ;;  %v631_v6 = vmax.f32 %v571_v3, 0.0  ;;  %v1528_v40 = vmov 0.0  }
 0x117   : > { %771 = vmatprep.subr.mxu0 %v650_v51  ;;  %878 = vmatprep.subr.mxu1 %v652_v24 }
 0x118   : > { %772 = vmatpush1.msra.mxu0 %v649_v53  ;;  %879 = vmatpush1.msra.mxu1 %v651_v22  ;;  %v696_v53 = vpop.permute.xlu0 %695  ;;  %v701_v60 = vpop.permute.xlu1 %700 }
 0x119   : > { %773 = vmatprep.subr.mxu0 %v646_v20  ;;  %880 = vmatprep.subr.mxu1 %v648_v56 }
 0x11a   : > { %774 = vmatpush1.msra.mxu0 %v645_v18  ;;  %881 = vmatpush1.msra.mxu1 %v647_v58 }
 0x11b   : > { %775 = vmatprep.subr.mxu0 %v642_v16  ;;  %882 = vmatprep.subr.mxu1 %v644_v61 }
 0x11c   : > { %776 = vmatpush1.msra.mxu0 %v641_v14  ;;  %883 = vmatpush1.msra.mxu1 %v643_v63 }
 0x11d   : > { %777 = vmatprep.subr.mxu0 %v638_v2  ;;  %884 = vmatprep.subr.mxu1 %v640_v12 }
 0x11e   : > { %778 = vmatpush1.msra.mxu0 %v637_v4  ;;  %885 = vmatpush1.msra.mxu1 %v639_v10  ;;  %v706_v4 = vpop.permute.xlu0 %705 }
 0x11f   : > { %779 = vmatprep.subr.mxu0 %v634_v11  ;;  %886 = vmatprep.subr.mxu1 %v636_v5 }
 0x120   : > { %780 = vmatpush1.msra.mxu0 %v633_v46  ;;  %887 = vmatpush1.msra.mxu1 %v635_v8 }
 0x121   : > { %781 = vmatprep.subr.mxu0 %v630_v9  ;;  %888 = vmatprep.subr.mxu1 %v632_v47 }
 0x122   : > { %782 = vmatpush1.msra.mxu0 %v629_v34  ;;  %889 = vmatpush1.msra.mxu1 %v631_v6 }
 0x123   : > { %1111 = vmatmul.mubr.msk.f32.vlgmr.msra.gmra.mxu0 %vm335_vm1, %v669_v7  ;;  %1120 = vmatmul.mubr.msk.f32.vlgmr.msra.gmra.mxu1 %vm335_vm1, %v669_v7 }
 0x124   : > { %821 = vmatprep.mubr.f32.mxu0 %v1528_v40  ;;  %928 = vmatprep.mubr.f32.mxu1 %v1528_v40 }
 0x127   : > { %1112 = vmatmul.mubr.msk.f32.gmra.mxu0 %vm335_vm1, %v670_v41  ;;  %1121 = vmatmul.mubr.msk.f32.gmra.mxu1 %vm335_vm1, %v670_v41 }
 0x128   : > { %827 = vmatprep.mubr.f32.mxu0 %v1528_v40  ;;  %934 = vmatprep.mubr.f32.mxu1 %v1528_v40 }
 0x12b   : > { %1113 = vmatmul.mubr.msk.f32.gmra.mxu0 %vm335_vm1, %v671_v42  ;;  %1122 = vmatmul.mubr.msk.f32.gmra.mxu1 %vm335_vm1, %v671_v42  ;;  %v711_v42 = vpop.permute.xlu1 %710 }
 0x12c   : > { %833 = vmatprep.mubr.f32.mxu0 %v1528_v40  ;;  %940 = vmatprep.mubr.f32.mxu1 %v1528_v40 }
 0x12f   : > { %1114 = vmatmul.mubr.msk.f32.gmra.mxu0 %vm335_vm1, %v672_v35  ;;  %1123 = vmatmul.mubr.msk.f32.gmra.mxu1 %vm335_vm1, %v672_v35 }
 0x130   : > { %839 = vmatprep.mubr.f32.mxu0 %v1528_v40  ;;  %946 = vmatprep.mubr.f32.mxu1 %v1528_v40 }
 0x133   : > { %1115 = vmatmul.mubr.msk.f32.gmra.mxu0 %vm335_vm1, %v673_v36  ;;  %1124 = vmatmul.mubr.msk.f32.gmra.mxu1 %vm335_vm1, %v673_v36 }
 0x134   : > { %845 = vmatprep.mubr.f32.mxu0 %v1528_v40  ;;  %952 = vmatprep.mubr.f32.mxu1 %v1528_v40 }
 0x137   : > { %1116 = vmatmul.mubr.msk.f32.gmra.mxu0 %vm335_vm1, %v674_v37  ;;  %1125 = vmatmul.mubr.msk.f32.gmra.mxu1 %vm335_vm1, %v674_v37 }
 0x138   : > { %851 = vmatprep.mubr.f32.mxu0 %v1528_v40  ;;  %958 = vmatprep.mubr.f32.mxu1 %v1528_v40 }
 0x13b   : > { %1117 = vmatmul.mubr.msk.f32.gmra.mxu0 %vm335_vm1, %v675_v38  ;;  %1126 = vmatmul.mubr.msk.f32.gmra.mxu1 %vm335_vm1, %v675_v38 }
 0x1e3   : > { %v817_v33 = vpop.f32.mrf.mxu0  ;;  %v924_v39 = vpop.f32.mrf.mxu1 }
 0x1e4   : > { %v818_v43 = vadd.f32 %v817_v33, %v686_v32  ;;  %v925_v44 = vadd.f32 %v924_v39, %v686_v32 }
 0x1e5   : > { %v819_v30 = vpop.f32.mrf.mxu0  ;;  %v926_v31 = vpop.f32.mrf.mxu1 }
 0x1e6   : > { %v965_v48 = vmax.f32 %v818_v43, 0.0  ;;  %v967_v49 = vmax.f32 %v925_v44, 0.0  ;;  %v820_v28 = vadd.f32 %v819_v30, %v686_v32  ;;  %v927_v29 = vadd.f32 %v926_v31, %v686_v32 }
 0x1e7   : > { %v823_v0 = vpop.f32.mrf.mxu0  ;;  %v930_v26 = vpop.f32.mrf.mxu1 }
 0x1e8   : > { %993 = vst [vmem:[%s1481_s26] sm:$0xff] %v965_v48  ;;  %995 = vst [vmem:[%s1481_s26 + $0x10] sm:$0xff] %v967_v49  ;;  %v966_v27 = vmax.f32 %v820_v28, 0.0  ;;  %v968_v50 = vmax.f32 %v927_v29, 0.0  ;;  %v824_v51 = vadd.f32 %v823_v0, %v691_v45  ;;  %v931_v24 = vadd.f32 %v930_v26, %v691_v45  ;;  %v716_v48 = vpop.permute.xlu0 %715 }
 0x1e9   : > { %v825_v25 = vpop.f32.mrf.mxu0  ;;  %v932_v52 = vpop.f32.mrf.mxu1 }
 0x1ea   : > { %994 = vst [vmem:[%s1481_s26 + $0x8] sm:$0xff] %v966_v27  ;;  %997 = vst.msk [vmem:[%s1481_s26 + $0x18] sm:$0xff] %vm996_vm2, %v968_v50  ;;  %v969_v22 = vmax.f32 %v824_v51, 0.0  ;;  %v971_v23 = vmax.f32 %v931_v24, 0.0  ;;  %v826_v54 = vadd.f32 %v825_v25, %v691_v45  ;;  %v933_v55 = vadd.f32 %v932_v52, %v691_v45 }
 0x1eb   : > { %v829_v20 = vpop.f32.mrf.mxu0  ;;  %v936_v56 = vpop.f32.mrf.mxu1 }
 0x1ec   : > { %998 = vst [vmem:[%s1481_s26 + $0x20] sm:$0xff] %v969_v22  ;;  %1000 = vst [vmem:[%s1481_s26 + $0x30] sm:$0xff] %v971_v23  ;;  %v970_v21 = vmax.f32 %v826_v54, 0.0  ;;  %v972_v57 = vmax.f32 %v933_v55, 0.0  ;;  %v830_v18 = vadd.f32 %v829_v20, %v696_v53  ;;  %v937_v58 = vadd.f32 %v936_v56, %v696_v53 }
 0x1ed   : > { %v831_v19 = vpop.f32.mrf.mxu0  ;;  %v938_v59 = vpop.f32.mrf.mxu1 }
 0x1ee   : > { %999 = vst [vmem:[%s1481_s26 + $0x28] sm:$0xff] %v970_v21  ;;  %1001 = vst.msk [vmem:[%s1481_s26 + $0x38] sm:$0xff] %vm996_vm2, %v972_v57  ;;  %v973_v16 = vmax.f32 %v830_v18, 0.0  ;;  %v975_v61 = vmax.f32 %v937_v58, 0.0  ;;  %v832_v17 = vadd.f32 %v831_v19, %v696_v53  ;;  %v939_v62 = vadd.f32 %v938_v59, %v696_v53 }
 0x1ef   : > { %v835_v14 = vpop.f32.mrf.mxu0  ;;  %v942_v63 = vpop.f32.mrf.mxu1 }
 0x1f0   : > { %1002 = vst [vmem:[%s1481_s26 + $0x40] sm:$0xff] %v973_v16  ;;  %1004 = vst [vmem:[%s1481_s26 + $0x50] sm:$0xff] %v975_v61  ;;  %v974_v15 = vmax.f32 %v832_v17, 0.0  ;;  %v976_v1 = vmax.f32 %v939_v62, 0.0  ;;  %v836_v2 = vadd.f32 %v835_v14, %v701_v60  ;;  %v943_v12 = vadd.f32 %v942_v63, %v701_v60 }
 0x1f1   : > { %v837_v13 = vpop.f32.mrf.mxu0  ;;  %v944_v3 = vpop.f32.mrf.mxu1 }
 0x1f2   : > { %1003 = vst [vmem:[%s1481_s26 + $0x48] sm:$0xff] %v974_v15  ;;  %1005 = vst.msk [vmem:[%s1481_s26 + $0x58] sm:$0xff] %vm996_vm2, %v976_v1  ;;  %v977_v10 = vmax.f32 %v836_v2, 0.0  ;;  %v979_v11 = vmax.f32 %v943_v12, 0.0  ;;  %v838_v5 = vadd.f32 %v837_v13, %v701_v60  ;;  %v945_v46 = vadd.f32 %v944_v3, %v701_v60 }
 0x1f3   : > { %v841_v8 = vpop.f32.mrf.mxu0  ;;  %v948_v9 = vpop.f32.mrf.mxu1 }
 0x1f4   : > { %1006 = vst [vmem:[%s1481_s26 + $0x60] sm:$0xff] %v977_v10  ;;  %1008 = vst [vmem:[%s1481_s26 + $0x70] sm:$0xff] %v979_v11  ;;  %v978_v47 = vmax.f32 %v838_v5, 0.0  ;;  %v980_v34 = vmax.f32 %v945_v46, 0.0  ;;  %v842_v6 = vadd.f32 %v841_v8, %v706_v4  ;;  %v949_v7 = vadd.f32 %v948_v9, %v706_v4 }
 0x1f5   : > { %v843_v40 = vpop.f32.mrf.mxu0  ;;  %v950_v41 = vpop.f32.mrf.mxu1 }
 0x1f6   : > { %1007 = vst [vmem:[%s1481_s26 + $0x68] sm:$0xff] %v978_v47  ;;  %1009 = vst.msk [vmem:[%s1481_s26 + $0x78] sm:$0xff] %vm996_vm2, %v980_v34  ;;  %v981_v35 = vmax.f32 %v842_v6, 0.0  ;;  %v983_v36 = vmax.f32 %v949_v7, 0.0  ;;  %v844_v37 = vadd.f32 %v843_v40, %v706_v4  ;;  %v951_v38 = vadd.f32 %v950_v41, %v706_v4 }
 0x1f7   : > { %v847_v32 = vpop.f32.mrf.mxu0  ;;  %v954_v33 = vpop.f32.mrf.mxu1 }
 0x1f8   : > { %1010 = vst [vmem:[%s1481_s26 + $0x80] sm:$0xff] %v981_v35  ;;  %1012 = vst [vmem:[%s1481_s26 + $0x90] sm:$0xff] %v983_v36  ;;  %v982_v39 = vmax.f32 %v844_v37, 0.0  ;;  %v984_v43 = vmax.f32 %v951_v38, 0.0  ;;  %v848_v44 = vadd.f32 %v847_v32, %v711_v42  ;;  %v955_v30 = vadd.f32 %v954_v33, %v711_v42 }
 0x1f9   : > { %v849_v31 = vpop.f32.mrf.mxu0  ;;  %v956_v45 = vpop.f32.mrf.mxu1 }
 0x1fa   : > { %1011 = vst [vmem:[%s1481_s26 + $0x88] sm:$0xff] %v982_v39  ;;  %1013 = vst.msk [vmem:[%s1481_s26 + $0x98] sm:$0xff] %vm996_vm2, %v984_v43  ;;  %v985_v49 = vmax.f32 %v848_v44, 0.0  ;;  %v987_v28 = vmax.f32 %v955_v30, 0.0  ;;  %v850_v29 = vadd.f32 %v849_v31, %v711_v42  ;;  %v957_v0 = vadd.f32 %v956_v45, %v711_v42 }
 0x1fb   : > { %v853_v26 = vpop.f32.mrf.mxu0  ;;  %v960_v27 = vpop.f32.mrf.mxu1 }
 0x1fc   : > { %1014 = vst [vmem:[%s1481_s26 + $0xa0] sm:$0xff] %v985_v49  ;;  %1016 = vst [vmem:[%s1481_s26 + $0xb0] sm:$0xff] %v987_v28  ;;  %v986_v50 = vmax.f32 %v850_v29, 0.0  ;;  %v988_v51 = vmax.f32 %v957_v0, 0.0  ;;  %v854_v24 = vadd.f32 %v853_v26, %v716_v48  ;;  %v961_v25 = vadd.f32 %v960_v27, %v716_v48 }
 0x1fd   : > { %v855_v52 = vpop.f32.mrf.mxu0  ;;  %v962_v53 = vpop.f32.mrf.mxu1 }
 0x1fe   : > { %1015 = vst [vmem:[%s1481_s26 + $0xa8] sm:$0xff] %v986_v50  ;;  %1017 = vst.msk [vmem:[%s1481_s26 + $0xb8] sm:$0xff] %vm996_vm2, %v988_v51  ;;  %v989_v22 = vmax.f32 %v854_v24, 0.0  ;;  %v991_v23 = vmax.f32 %v961_v25, 0.0  ;;  %v856_v54 = vadd.f32 %v855_v52, %v716_v48  ;;  %v963_v55 = vadd.f32 %v962_v53, %v716_v48 }
 0x200   : > { %1018 = vst [vmem:[%s1481_s26 + $0xc0] sm:$0x3] %v989_v22  ;;  %1020 = vst [vmem:[%s1481_s26 + $0xd0] sm:$0x3] %v991_v23  ;;  %v990_v20 = vmax.f32 %v856_v54, 0.0  ;;  %v992_v56 = vmax.f32 %v963_v55, 0.0 }
 0x202   : > { %1019 = vst [vmem:[%s1481_s26 + $0xc8] sm:$0x3] %v990_v20  ;;  %1022 = vst.msk [vmem:[%s1481_s26 + $0xd8] sm:$0x3] %vm1021_vm3, %v992_v56 }
 0x203 PF: > { %s15_s18 = sadd.s32 1, %s1149_s18  }
 0x204   : > { %p12_p4 = scmp.ge.s32.totalorder %s15_s18, 4  }
 0x206   :  { %14 = sbr.rel (!%p12_p4) target bundleno = 1 (0x1), region = 70 }

</bundles_post_ra>
